<compile_context>
chip_gen: v7x
topology: tpu7x:2x2x1
jax: 0.10.0
libtpu: 0.0.40
codegen_flags: <defaults>
</compile_context>

<pallas_src>
import jax
import jax.numpy as jnp
from jax.experimental import pallas as pl
from jax.experimental.pallas import tpu as pltpu


def _round_up(x, m):
    return ((x + m - 1) // m) * m


def _choose_row_tile(rows, block_rows):
    # int8 adjacency's native tile is (32, 128): keep row tiles multiples of 32.
    tm = min(_round_up(block_rows, 32), _round_up(rows, 32))
    # Guarantee >= 2 row tiles (when rows allow) so the "parallel" row axis can
    # actually split across v7x's two TensorCores.
    if _round_up(rows, tm) // tm < 2 and rows > 32:
        tm = _round_up(-(-rows // 2), 32)
    return tm


def _default_vmem_limit():
    # Derive a per-generation scoped-VMEM limit; conservative fallback if the
    # query is unavailable.  (With K-tiling the working set is tiny anyway.)
    try:
        cap = pltpu.get_tpu_info().vmem_capacity_bytes
        return min(int(cap) * 3 // 4, 100 * 1024 * 1024)
    except Exception:
        return 32 * 1024 * 1024


def _gcn_side_kernel(adj_ref, ew_ref, per_ref, mean_ref, per_acc, mean_acc):
    """Grid = (row_tiles [parallel], behaviors [arbitrary], K [arbitrary]).

    adj_ref : (tm, tk)       int8  -- one behavior's (row-tile, K-tile) of A/AT
    ew_ref  : (tk, out_dim)  bf16  -- K-tile of EW = src_emb @ W
    per_ref : (tm, out_dim)        -- per-behavior activated output tile
    mean_ref: (tm, out_dim)        -- mean-over-behavior activated output tile
    per_acc : (tm, out_dim)  f32   -- per-behavior logit accumulator (over K)
    mean_acc: (tm, out_dim)  f32   -- mean logit accumulator (over behaviors)
    """
    b = pl.program_id(1)
    k = pl.program_id(2)
    last_b = pl.num_programs(1) - 1
    last_k = pl.num_programs(2) - 1

    # int8 0/1 adjacency -> bf16 via f32 (guaranteed-lowering VPU converts),
    # bf16 MXU matmul with f32 accumulation.
    adj_bf16 = adj_ref[...].astype(jnp.float32).astype(jnp.bfloat16)
    logits = jnp.dot(adj_bf16, ew_ref[...], preferred_element_type=jnp.float32)

    # Accumulate this behavior's logits over the contraction (K) axis.
    @pl.when(k == 0)
    def _():
        per_acc[...] = logits

    @pl.when(k != 0)
    def _():
        per_acc[...] += logits

    # Per-behavior transformed embedding (committed once per (row-tile, b)).
    @pl.when(k == last_k)
    def _():
        per_ref[...] = jax.nn.sigmoid(per_acc[...]).astype(per_ref.dtype)

    # Fold the finished behavior into the mean accumulator.
    @pl.when(jnp.logical_and(k == last_k, b == 0))
    def _():
        mean_acc[...] = per_acc[...]

    @pl.when(jnp.logical_and(k == last_k, b != 0))
    def _():
        mean_acc[...] += per_acc[...]

    # Final behavior: mean over behaviors, activate, commit.
    @pl.when(jnp.logical_and(k == last_k, b == last_b))
    def _():
        mean_logits = mean_acc[...] * (1.0 / pl.num_programs(1))
        mean_ref[...] = jax.nn.sigmoid(mean_logits).astype(mean_ref.dtype)


def gcn_side(adj, src_emb, w, *, block_rows=256, block_cols=512,
             out_dtype=jnp.bfloat16, vmem_limit_bytes=None):
    """adj: (B, rows, cols) 0/1 adjacency (int8 preferred — no cast pass),
    src_emb: (cols, in_dim), w: (in_dim, out_dim).

    Returns (per_behavior: (B, rows, out_dim), mean_out: (rows, out_dim)),
    both in `out_dtype`.
    """
    B, rows, cols = adj.shape
    out_dim = w.shape[1]

    # EW fusion: exact by linearity; one small f32 GEMM up front, then a single
    # streamed matmul per tile in the kernel.
    ew = jnp.dot(src_emb.astype(jnp.float32), w.astype(jnp.float32))
    ew = ew.astype(jnp.bfloat16)

    # Adjacency streams at 1 byte/entry (0/1 is exact in int8).
    if adj.dtype != jnp.int8:
        # TODO(synk): keep the adjacency at rest in int8 upstream so this
        # full-array cast pass never runs in front of the mem-bound kernel.
        adj = adj.astype(jnp.int8)

    tm = _choose_row_tile(rows, block_rows)
    tk = min(_round_up(block_cols, 128), _round_up(cols, 128))
    padded_rows = _round_up(rows, tm)
    padded_cols = _round_up(cols, tk)
    if padded_rows != rows or padded_cols != cols:
        adj = jnp.pad(adj, ((0, 0), (0, padded_rows - rows),
                            (0, padded_cols - cols)))
    if padded_cols != cols:
        ew = jnp.pad(ew, ((0, padded_cols - cols), (0, 0)))

    if vmem_limit_bytes is None:
        vmem_limit_bytes = _default_vmem_limit()

    grid = (padded_rows // tm, B, padded_cols // tk)

    per, mean_out = pl.pallas_call(
        _gcn_side_kernel,
        out_shape=(
            jax.ShapeDtypeStruct((B, padded_rows, out_dim), out_dtype),
            jax.ShapeDtypeStruct((padded_rows, out_dim), out_dtype),
        ),
        grid_spec=pltpu.PrefetchScalarGridSpec(
            num_scalar_prefetch=0,
            grid=grid,
            in_specs=[
                # Behavior dim squeezed out of the kernel view.
                pl.BlockSpec((None, tm, tk), lambda i, b, k: (b, i, k)),
                pl.BlockSpec((tk, out_dim), lambda i, b, k: (k, 0)),
            ],
            out_specs=[
                pl.BlockSpec((None, tm, out_dim), lambda i, b, k: (b, i, 0)),
                pl.BlockSpec((tm, out_dim), lambda i, b, k: (i, 0)),
            ],
            scratch_shapes=[
                pltpu.VMEM((tm, out_dim), jnp.float32),   # per-behavior acc
                pltpu.VMEM((tm, out_dim), jnp.float32),   # mean acc
            ],
        ),
        compiler_params=pltpu.CompilerParams(
            dimension_semantics=("parallel", "arbitrary", "arbitrary"),
            vmem_limit_bytes=vmem_limit_bytes,
        ),
    )(adj, ew)

    if padded_rows != rows:
        per = per[:, :rows]
        mean_out = mean_out[:rows]
    return per, mean_out


def gcn_layer_forward(user_embedding, item_embedding, A, AT, u_w, i_w,
                      *, block_rows=256, block_cols=512):
    """Mirrors GCNLayer.forward.

    user_embedding: (userNum, in_dim), item_embedding: (itemNum, in_dim)
    A:  (B, userNum, itemNum)   dense int8 stand-in for behavior_mats[i]['A']
    AT: (B, itemNum, userNum)   dense int8 stand-in for behavior_mats[i]['AT']
    Returns (user_embedding, item_embedding, user_embeddings, item_embeddings).
    """
    user_embeddings, user_emb_mean = gcn_side(
        A, item_embedding, u_w, block_rows=block_rows, block_cols=block_cols)
    item_embeddings, item_emb_mean = gcn_side(
        AT, user_embedding, i_w, block_rows=block_rows, block_cols=block_cols)
    return user_emb_mean, item_emb_mean, user_embeddings, item_embeddings


def xavier_uniform(key, shape, dtype=jnp.float32):
    fan_in, fan_out = shape
    limit = jnp.sqrt(6.0 / (fan_in + fan_out))
    return jax.random.uniform(key, shape, dtype, -limit, limit)


if __name__ == "__main__":
    key = jax.random.PRNGKey(0)
    k_uw, k_iw, k_ue, k_ie, k_a = jax.random.split(key, 5)

    # Lane-dense shapes: dims multiple of 128, rows multiples of the row tile.
    num_behaviors = 3
    userNum, itemNum = 256, 384
    in_dim, out_dim = 128, 128
    block_rows = 128

    # Parameters (deterministic xavier-uniform init, as in the module).
    u_w = xavier_uniform(k_uw, (in_dim, out_dim))
    i_w = xavier_uniform(k_iw, (in_dim, out_dim))

    # Inputs.
    user_embedding = jax.random.normal(k_ue, (userNum, in_dim), jnp.float32)
    item_embedding = jax.random.normal(k_ie, (itemNum, in_dim), jnp.float32)

    # Synthetic "sparse" behavior adjacency matrices, stored dense in int8
    # (no f32->compact cast pass ever runs in front of the kernel).
    A = (jax.random.uniform(k_a, (num_behaviors, userNum, itemNum)) < 0.05
         ).astype(jnp.int8)
    AT = jnp.transpose(A, (0, 2, 1))

    u_mean, i_mean, u_all, i_all = gcn_layer_forward(
        user_embedding, item_embedding, A, AT, u_w, i_w,
        block_rows=block_rows)
    jax.block_until_ready((u_mean, i_mean, u_all, i_all))

    # Pure-JAX reference using the same EW-fused, bf16-rounded math as the
    # kernel (A_b @ (E @ W) with bf16 EW, f32 accumulation).
    A_bf = A.astype(jnp.bfloat16)
    AT_bf = AT.astype(jnp.bfloat16)
    u_ew = (item_embedding @ u_w).astype(jnp.bfloat16)   # EW for user side
    i_ew = (user_embedding @ i_w).astype(jnp.bfloat16)   # EW for item side
    u_logits = jnp.einsum("bui,if->buf", A_bf, u_ew,
                          preferred_element_type=jnp.float32)
    i_logits = jnp.einsum("biu,uf->bif", AT_bf, i_ew,
                          preferred_element_type=jnp.float32)
    ref_u_mean = jax.nn.sigmoid(u_logits.mean(0))
    ref_i_mean = jax.nn.sigmoid(i_logits.mean(0))
    ref_u_all = jax.nn.sigmoid(u_logits)
    ref_i_all = jax.nn.sigmoid(i_logits)

    tol = 1e-2  # bf16 output quantization on sigmoid range [0, 1]
    assert jnp.allclose(u_mean.astype(jnp.float32), ref_u_mean, atol=tol)
    assert jnp.allclose(i_mean.astype(jnp.float32), ref_i_mean, atol=tol)
    assert jnp.allclose(u_all.astype(jnp.float32), ref_u_all, atol=tol)
    assert jnp.allclose(i_all.astype(jnp.float32), ref_i_all, atol=tol)

    print("KERNEL_OK")
</pallas_src>

<mosaic_0001>
module attributes {stable_mosaic.version = 11 : i64} {
  func.func @_gcn_side_kernel(%arg0: i32, %arg1: i32, %arg2: i32, %arg3: memref<1x128x384xi8, #tpu.memory_space<vmem>>, %arg4: memref<384x128xbf16, #tpu.memory_space<vmem>>, %arg5: memref<1x128x128xbf16, #tpu.memory_space<vmem>>, %arg6: memref<128x128xbf16, #tpu.memory_space<vmem>>, %arg7: memref<128x128xf32, #tpu.memory_space<vmem>>, %arg8: memref<128x128xf32, #tpu.memory_space<vmem>>) attributes {dimension_semantics = [#tpu.dimension_semantics<parallel>, #tpu.dimension_semantics<arbitrary>, #tpu.dimension_semantics<arbitrary>], iteration_bounds = array<i64: 2, 3, 1>, scalar_prefetch = 0 : i64, scratch_operands = 2 : i64, tpu.core_type = #tpu.core_type<tc>, window_params = [{transform_indices = @transform_0, window_bounds = array<i64: 1, 128, 384>}, {transform_indices = @transform_1, window_bounds = array<i64: 384, 128>}, {transform_indices = @transform_2, window_bounds = array<i64: 1, 128, 128>}, {transform_indices = @transform_3, window_bounds = array<i64: 128, 128>}]} {
    %c0 = arith.constant 0 : index
    %c0_0 = arith.constant 0 : index
    %c0_1 = arith.constant 0 : index
    %0 = vector.load %arg3[%c0, %c0_0, %c0_1] : memref<1x128x384xi8, #tpu.memory_space<vmem>>, vector<1x128x384xi8>
    %1 = vector.shape_cast %0 : vector<1x128x384xi8> to vector<128x384xi8>
    %2 = arith.sitofp %1 : vector<128x384xi8> to vector<128x384xf32>
    %3 = arith.truncf %2 : vector<128x384xf32> to vector<128x384xbf16>
    %c0_2 = arith.constant 0 : index
    %c0_3 = arith.constant 0 : index
    %4 = vector.load %arg4[%c0_2, %c0_3] : memref<384x128xbf16, #tpu.memory_space<vmem>>, vector<384x128xbf16>
    %cst = arith.constant dense<0.000000e+00> : vector<128x128xf32>
    %5 = tpu.matmul %3, %4, %cst {dimension_numbers = #tpu.dot_dimension_numbers<[1], [0], [0], [1], [0, 0, 1, 1], [], []>} : vector<128x384xbf16>, vector<384x128xbf16>, vector<128x128xf32> -> vector<128x128xf32>
    %c0_i32 = arith.constant 0 : i32
    %6 = arith.cmpi eq, %arg2, %c0_i32 : i32
    %7 = arith.extui %6 : i1 to i32
    %c0_i32_4 = arith.constant 0 : i32
    %8 = arith.cmpi ne, %7, %c0_i32_4 : i32
    scf.if %8 {
      %c0_17 = arith.constant 0 : index
      %c0_18 = arith.constant 0 : index
      %30 = vector.load %arg7[%c0_17, %c0_18] : memref<128x128xf32, #tpu.memory_space<vmem>>, vector<128x128xf32>
      tpu.vector_store %arg7[%c0_17, %c0_18], %5 {strides = array<i32>} : memref<128x128xf32, #tpu.memory_space<vmem>>, vector<128x128xf32>,
    } else {
    }
    %c0_i32_5 = arith.constant 0 : i32
    %9 = arith.cmpi ne, %arg2, %c0_i32_5 : i32
    %10 = arith.extui %9 : i1 to i32
    %c0_i32_6 = arith.constant 0 : i32
    %11 = arith.cmpi ne, %10, %c0_i32_6 : i32
    scf.if %11 {
      %c0_17 = arith.constant 0 : index
      %c0_18 = arith.constant 0 : index
      %30 = vector.load %arg7[%c0_17, %c0_18] : memref<128x128xf32, #tpu.memory_space<vmem>>, vector<128x128xf32>
      %31 = arith.addf %30, %5 : vector<128x128xf32>
      %c0_19 = arith.constant 0 : index
      %c0_20 = arith.constant 0 : index
      %32 = vector.load %arg7[%c0_19, %c0_20] : memref<128x128xf32, #tpu.memory_space<vmem>>, vector<128x128xf32>
      tpu.vector_store %arg7[%c0_19, %c0_20], %31 {strides = array<i32>} : memref<128x128xf32, #tpu.memory_space<vmem>>, vector<128x128xf32>,
    } else {
    }
    %c0_i32_7 = arith.constant 0 : i32
    %12 = arith.cmpi eq, %arg2, %c0_i32_7 : i32
    %13 = arith.extui %12 : i1 to i32
    %c0_i32_8 = arith.constant 0 : i32
    %14 = arith.cmpi ne, %13, %c0_i32_8 : i32
    scf.if %14 {
      %c0_17 = arith.constant 0 : index
      %c0_18 = arith.constant 0 : index
      %30 = vector.load %arg7[%c0_17, %c0_18] : memref<128x128xf32, #tpu.memory_space<vmem>>, vector<128x128xf32>
      %31 = arith.negf %30 : vector<128x128xf32>
      %32 = math.exp %31 : vector<128x128xf32>
      %cst_19 = arith.constant 1.000000e+00 : f32
      %33 = vector.broadcast %cst_19 : f32 to vector<128x128xf32>
      %34 = arith.addf %33, %32 : vector<128x128xf32>
      %35 = arith.divf %33, %34 : vector<128x128xf32>
      %36 = arith.truncf %35 : vector<128x128xf32> to vector<128x128xbf16>
      %c0_20 = arith.constant 0 : index
      %c0_21 = arith.constant 0 : index
      %c0_22 = arith.constant 0 : index
      %37 = vector.load %arg5[%c0_20, %c0_21, %c0_22] : memref<1x128x128xbf16, #tpu.memory_space<vmem>>, vector<1x128x128xbf16>
      %38 = vector.shape_cast %37 : vector<1x128x128xbf16> to vector<128x128xbf16>
      %39 = vector.shape_cast %36 : vector<128x128xbf16> to vector<1x128x128xbf16>
      tpu.vector_store %arg5[%c0_20, %c0_21, %c0_22], %39 {strides = array<i32>} : memref<1x128x128xbf16, #tpu.memory_space<vmem>>, vector<1x128x128xbf16>,
    } else {
    }
    %c0_i32_9 = arith.constant 0 : i32
    %15 = arith.cmpi eq, %arg2, %c0_i32_9 : i32
    %c0_i32_10 = arith.constant 0 : i32
    %16 = arith.cmpi eq, %arg1, %c0_i32_10 : i32
    %17 = arith.andi %15, %16 : i1
    %18 = arith.extui %17 : i1 to i32
    %c0_i32_11 = arith.constant 0 : i32
    %19 = arith.cmpi ne, %18, %c0_i32_11 : i32
    scf.if %19 {
      %c0_17 = arith.constant 0 : index
      %c0_18 = arith.constant 0 : index
      %30 = vector.load %arg7[%c0_17, %c0_18] : memref<128x128xf32, #tpu.memory_space<vmem>>, vector<128x128xf32>
      %c0_19 = arith.constant 0 : index
      %c0_20 = arith.constant 0 : index
      %31 = vector.load %arg8[%c0_19, %c0_20] : memref<128x128xf32, #tpu.memory_space<vmem>>, vector<128x128xf32>
      tpu.vector_store %arg8[%c0_19, %c0_20], %30 {strides = array<i32>} : memref<128x128xf32, #tpu.memory_space<vmem>>, vector<128x128xf32>,
    } else {
    }
    %c0_i32_12 = arith.constant 0 : i32
    %20 = arith.cmpi eq, %arg2, %c0_i32_12 : i32
    %c0_i32_13 = arith.constant 0 : i32
    %21 = arith.cmpi ne, %arg1, %c0_i32_13 : i32
    %22 = arith.andi %20, %21 : i1
    %23 = arith.extui %22 : i1 to i32
    %c0_i32_14 = arith.constant 0 : i32
    %24 = arith.cmpi ne, %23, %c0_i32_14 : i32
    scf.if %24 {
      %c0_17 = arith.constant 0 : index
      %c0_18 = arith.constant 0 : index
      %30 = vector.load %arg8[%c0_17, %c0_18] : memref<128x128xf32, #tpu.memory_space<vmem>>, vector<128x128xf32>
      %c0_19 = arith.constant 0 : index
      %c0_20 = arith.constant 0 : index
      %31 = vector.load %arg7[%c0_19, %c0_20] : memref<128x128xf32, #tpu.memory_space<vmem>>, vector<128x128xf32>
      %32 = arith.addf %30, %31 : vector<128x128xf32>
      %c0_21 = arith.constant 0 : index
      %c0_22 = arith.constant 0 : index
      %33 = vector.load %arg8[%c0_21, %c0_22] : memref<128x128xf32, #tpu.memory_space<vmem>>, vector<128x128xf32>
      tpu.vector_store %arg8[%c0_21, %c0_22], %32 {strides = array<i32>} : memref<128x128xf32, #tpu.memory_space<vmem>>, vector<128x128xf32>,
    } else {
    }
    %c0_i32_15 = arith.constant 0 : i32
    %25 = arith.cmpi eq, %arg2, %c0_i32_15 : i32
    %c2_i32 = arith.constant 2 : i32
    %26 = arith.cmpi eq, %arg1, %c2_i32 : i32
    %27 = arith.andi %25, %26 : i1
    %28 = arith.extui %27 : i1 to i32
    %c0_i32_16 = arith.constant 0 : i32
    %29 = arith.cmpi ne, %28, %c0_i32_16 : i32
    scf.if %29 {
      %c0_17 = arith.constant 0 : index
      %c0_18 = arith.constant 0 : index
      %30 = vector.load %arg8[%c0_17, %c0_18] : memref<128x128xf32, #tpu.memory_space<vmem>>, vector<128x128xf32>
      %cst_19 = arith.constant 0.333333343 : f32
      %31 = vector.broadcast %cst_19 : f32 to vector<128x128xf32>
      %32 = arith.mulf %30, %31 : vector<128x128xf32>
      %33 = arith.negf %32 : vector<128x128xf32>
      %34 = math.exp %33 : vector<128x128xf32>
      %cst_20 = arith.constant 1.000000e+00 : f32
      %35 = vector.broadcast %cst_20 : f32 to vector<128x128xf32>
      %36 = arith.addf %35, %34 : vector<128x128xf32>
      %37 = arith.divf %35, %36 : vector<128x128xf32>
      %38 = arith.truncf %37 : vector<128x128xf32> to vector<128x128xbf16>
      %c0_21 = arith.constant 0 : index
      %c0_22 = arith.constant 0 : index
      %39 = vector.load %arg6[%c0_21, %c0_22] : memref<128x128xbf16, #tpu.memory_space<vmem>>, vector<128x128xbf16>
      tpu.vector_store %arg6[%c0_21, %c0_22], %38 {strides = array<i32>} : memref<128x128xbf16, #tpu.memory_space<vmem>>, vector<128x128xbf16>,
    } else {
    }
    return
  }
  func.func @transform_0(%arg0: i32, %arg1: i32, %arg2: i32) -> (i32, i32, i32) {
    %c0_i32 = arith.constant 0 : i32
    return %arg1, %arg0, %arg2 : i32, i32, i32
  }
  func.func @transform_1(%arg0: i32, %arg1: i32, %arg2: i32) -> (i32, i32) {
    %c0_i32 = arith.constant 0 : i32
    %c0_i32_0 = arith.constant 0 : i32
    return %arg2, %c0_i32 : i32, i32
  }
  func.func @transform_2(%arg0: i32, %arg1: i32, %arg2: i32) -> (i32, i32, i32) {
    %c0_i32 = arith.constant 0 : i32
    %c0_i32_0 = arith.constant 0 : i32
    return %arg1, %arg0, %c0_i32 : i32, i32, i32
  }
  func.func @transform_3(%arg0: i32, %arg1: i32, %arg2: i32) -> (i32, i32) {
    %c0_i32 = arith.constant 0 : i32
    %c0_i32_0 = arith.constant 0 : i32
    return %arg0, %c0_i32 : i32, i32
  }
}

</mosaic_0001>

<bundles_post_ra>
// kernel: tpu_custom_call.1
= control target key start
LH: loop header
LB: loop body
LE: loop exit
PB: predicated region body
PF: predicated region fallthrough
CT: control target
= control target key end

     0   :  { %s2721_s0 = inlined_call_operand.hbm [shape: s8[3,256,384], index: 0, kind: input, shape index: {}]   ;;  %s2722_s1 = inlined_call_operand.hbm [shape: bf16[384,128], index: 1, kind: input, shape index: {}]   ;;  %s2723_s2 = inlined_call_operand.hbm [shape: bf16[3,256,128], index: 2, kind: output, shape index: {0}]   ;;  %s2724_s3 = inlined_call_operand.hbm [shape: bf16[256,128], index: 3, kind: output, shape index: {1}]  }
   0x1   :  { %2739 = sst [smem:[#allocation22_spill]] %s2722_s1 }
   0x2   :  { %2740 = sst [smem:[#allocation23_spill]] %s2724_s3 }
   0x3   :  { %9 = vsyncpa [#allocation5], 0 }
   0x4   :  { %11 = vsyncpa [#allocation5 + $0x1], 0 }
   0x5   :  { %12 = vsyncpa [#allocation8], 0 }
   0x6   :  { %13 = vsyncpa [#allocation6], 0 }
   0x7   :  { %15 = vsyncpa [#allocation6 + $0x1], 0 }
   0x8   :  { %16 = vsyncpa [#allocation11], 0 }
   0x9   :  { %18 = vsyncpa [#allocation11 + $0x1], 0  ;;  %s2325_s12 = smov 0   ;;  %s2327_s13 = smov 0  }
   0xa   :  { %s2329_s14 = smov 0   ;;  %s2331_s15 = smov 0  }
   0xb   :  { %s2333_s16 = smov 0   ;;  %s2335_s17 = smov 0  }
   0xc   :  { %s2337_s18 = smov 0   ;;  %s2339_s19 = smov 0  }
   0xd   :  { %s2341_s20 = smov 0   ;;  %s2343_s21 = smov 0  }
   0xe   :  { %s2345_s22 = smov 0  }
   0xf LB: > { %2741 = sst [smem:[#allocation16_spill]] %s2253_s12  ;;  %s1443_s23 = sadd.s32 4294967295, %s2293_s22   ;;  %s2293_s22 = sphi %s2345_s22, %s24_s22   ;;  %s2289_s21 = sphi %s2343_s21, %s2784_s21   ;;  %s2285_s20 = sphi %s2341_s20, %s2783_s20   ;;  %s2281_s19 = sphi %s2339_s19, %s2782_s19   ;;  %s2277_s18 = sphi %s2337_s18, %s2781_s18   ;;  %s2273_s17 = sphi %s2335_s17, %s2780_s17   ;;  %s2269_s16 = sphi %s2333_s16, %s2779_s16   ;;  %s2265_s15 = sphi %s2331_s15, %s2778_s15   ;;  %s2261_s14 = sphi %s2329_s14, %s2777_s14   ;;  %s2257_s13 = sphi %s2327_s13, %s2776_s13   ;;  %s2253_s12 = sphi %s2325_s12, %s2775_s12  }
  0x10   : > { %2742 = sst [smem:[#allocation17_spill]] %s2265_s15  ;;  %s1444_s24 = sadd.s32 4294967294, %s2293_s22  }
  0x11   : > { %p67_p0 = scmp.ne.s32.totalorder %s2269_s16, %s2265_s15  ;;  %p2384_p1 = scmp.eq.s32.totalorder %s1443_s23, 0 }
  0x12   : > { %p2388_p2 = scmp.eq.s32.totalorder %s1443_s23, 5  ;;  %p125_p3 = scmp.eq.s32.totalorder %s1444_s24, 5 }
  0x13   : > { %s2743_s25 = scalar_select %p2384_p1, 1, 0 }
  0x14   : > { %s2744_s26 = scalar_select %p2388_p2, 1, 0 }
  0x15   : > { %p2394_p4 = por %p2384_p1, %p67_p0  ;;  %p2399_p5 = por %p125_p3, %p67_p0 }
  0x16   : > { %p144_p6 = scmp.ne.s32.totalorder %s2261_s14, %s2257_s13  ;;  %p150_p7 = scmp.ne.s32.totalorder %s2257_s13, %s2253_s12 }
  0x17   : > { %s2745_s27 = scalar_select %p2394_p4, 1, 0 }
  0x18   : > { %s2746_s29 = scalar_select %p2399_p5, 1, 0 }
  0x19   : > { %p1445_p8 = scmp.ge.s32.totalorder %s2293_s22, 1  ;;  %p2410_p9 = por %p144_p6, %p2388_p2 }
  0x1a   : > { %2747 = sst [smem:[#allocation18_spill]] %s2746_s29  ;;  %p158_p10 = scmp.lt.s32.totalorder %s2293_s22, 7 }
  0x1b   : > { %s2748_s30 = scalar_select %p2410_p9, 1, 0 }
  0x1c   : > { %p2415_p11 = por %p150_p7, %p125_p3  ;;  %p2419_p12 = pnand %p1445_p8, %p158_p10 }
  0x1d   : > { %2749 = sst [smem:[#allocation19_spill]] %s2748_s30  ;;  %s2295_s6 = smov [#allocation7]  }
  0x1e   : > { %s2750_s4 = scalar_select %p2415_p11, 1, 0 }
  0x1f   : > { %s2752_s5 = scalar_select %p2419_p12, 1, 0 }
  0x20   : > { %2751 = sst [smem:[#allocation20_spill]] %s2750_s4  ;;  %s173_s7 = sshll.u32 %s2295_s6, 4  ;;  %s174_s7 = int_to_ptr.vmem [resolvable:$true] %s173_s7 }
  0x21   : > { %p1811_p13 = pneg %p2419_p12  ;;  %s2754_s1 = sld [smem:[#allocation22_spill]] }
  0x23   : > { %p2427_p0 = pnand %p1811_p13, %p2384_p1 }
  0x25   : > { %p2079_p6 = pneg %p2427_p0 }
  0x27   : > { %s2077_s11 = scalar_lea.hbm %s2754_s1, 3072 }
  0x28   : > { %p2078_p3 = scmp.ne.s32.totalorder %s2754_s1, %s2077_s11  ;;  %p2084_p10 = scmp.lt.u32.totalorder %s2077_s11, %s2754_s1 }
  0x2a   : > { %p2080_p7 = pnand %p2079_p6, %p2078_p3 }
  0x2c   : > { %p2081_p8 = pneg %p2080_p7 }
  0x2e   : > { %p2086_p13 = pnand %p2084_p10, %p2081_p8 }
  0x30   : > { %2089 = shalt.err (!%p2086_p13)
}
  0x31   : > { %s2090_s4 = scalar_lea.vmem %s174_s7, 3072  ;;  %p2098_p1 = scmp.lt.s32.totalorder %s174_s7, %s174_s7 }
  0x32   : > { %p2091_p11 = scmp.ne.s32.totalorder %s174_s7, %s2090_s4  ;;  %p2099_p4 = scmp.lt.s32.totalorder %s2090_s4, %s2090_s4 }
  0x34   : > { %p2093_p5 = pnand %p2091_p11, %p2079_p6  ;;  %p2100_p12 = por %p2099_p4, %p2098_p1 }
  0x36   : > { %p2094_p9 = pneg %p2093_p5 }
  0x38   : > { %p2101_p2 = pnand %p2100_p12, %p2094_p9 }
  0x3a   : > { %2104 = shalt.err (!%p2101_p2)
}
  0x3b   : > { %s2296_s9 = smov 64   ;;  %s2297_s28 = smov 4  }
  0x3c   : > { %1814 = dma.hbm_to_vmem [thread:$0]  (!%p2427_p0), %s2754_s1, 3072, %s174_s7, [#allocation8], %s2296_s9, %s2296_s9, %s2297_s28  }
  0x3d   : > { %s39_s11 = sadd.s32 1, %s2285_s20  ;;  %s43_s23 = sadd.s32 1, %s2289_s21 }
  0x3e   : > { %p41_p1 = scmp.ge.s32.totalorder %s39_s11, 3  ;;  %s54_s24 = sadd.s32 1, %s2273_s17 }
  0x3f   : > { %p61_p2 = scmp.ne.s32.totalorder %s2273_s17, %s2269_s16  ;;  %p62_p4 = scmp.eq.s32.totalorder %s2293_s22, 0 }
  0x40   : > { %s2786_s11 = smov (%p41_p1, %s39_s11), 0  ;;  %s2788_s23 = smov (!%p41_p1, %s43_s23), %s2289_s21 }
  0x41   : > { %2755 = sst [smem:[#allocation21_spill]] %s2786_s11  ;;  %s47_s8 = ssub.s32 %s2285_s20, %s2786_s11 }
  0x42   : > { %p2458_p5 = por %p62_p4, %p61_p2  ;;  %p45_p9 = scmp.ge.s32.totalorder %s2788_s23, 2 }
  0x43   : > { %p2757_p11 = scmp.ne.s32.totalorder %s2744_s26, 0  ;;  %p1827_p0 = scmp.lt.s32.totalorder %s2293_s22, 6 }
  0x44   : > { %s187_s9 = sand.u32 1, %s2273_s17   ;;  %s2790_s23 = smov (%p45_p9, %s2788_s23), 0 }
  0x45   : > { %p2464_p12 = por %p2757_p11, %p61_p2  ;;  %s1797_s28 = smul.u32 96, %s187_s9 }
  0x46   : > { %s48_s10 = ssub.s32 %s2289_s21, %s2790_s23  ;;  %s1798_s4 = smul.u32 12, %s2289_s21 }
  0x47   : > { %s49_s1 = sor.u32 %s48_s10, %s47_s8  ;;  %p132_p3 = scmp.eq.s32.totalorder %s48_s10, 0 }
  0x48   : > { %p52_p6 = scmp.eq.s32.totalorder %s49_s1, 0  ;;  %s2759_s11 = sadd.s32 1, %s2261_s14 }
  0x49   : > { %s2478_s12 = scalar_select %p132_p3, %s2261_s14, %s2759_s11  }
  0x4a   : > { %s2481_s26 = scalar_select %p52_p6, %s2273_s17, %s54_s24  }
  0x4b   : > { %s1799_s29 = smul.u32 24, %s2285_s20  ;;  %s191_s15 = scalar_lea.vmem [#allocation4], %s1797_s28 }
  0x4c   : > { %s203_s3 = sshll.u32 %s191_s15, 4  ;;  %p2490_p7 = pnand %p1827_p0, %p2458_p5  ;;  %s2484_s3 = int_to_ptr.vmem [resolvable:$true] %s203_s3 }
  0x4d   : > { %s200_s8 = sadd.s32 %s1799_s29, %s1798_s4  ;;  %s2499_s15 = scalar_lea.sflag [#allocation5], %s187_s9 }
  0x4e   : > { %s1450_s1 = sshll.u32 %s200_s8, 7  ;;  %p2107_p10 = pneg %p2490_p7 }
  0x4f   : > { %s2497_s24 = scalar_lea.hbm %s2721_s0, %s1450_s1  ;;  %s2110_s4 = scalar_lea.hbm %s2721_s0, 9216 }
  0x50   : > { %s2105_s6 = scalar_lea.hbm %s2497_s24, 1536  ;;  %p2111_p2 = scmp.lt.u32.totalorder %s2497_s24, %s2721_s0 }
  0x51   : > { %p2106_p8 = scmp.ne.s32.totalorder %s2497_s24, %s2105_s6  ;;  %p2112_p4 = scmp.lt.u32.totalorder %s2110_s4, %s2105_s6 }
  0x52   : > { %p2114_p9 = scmp.lt.u32.totalorder %s2105_s6, %s2497_s24 }
  0x53   : > { %p2108_p13 = pnand %p2107_p10, %p2106_p8  ;;  %p2113_p5 = por %p2112_p4, %p2111_p2 }
  0x55   : > { %p2109_p1 = pneg %p2108_p13  ;;  %p2115_p11 = por %p2114_p9, %p2113_p5 }
  0x57   : > { %p2116_p0 = pnand %p2115_p11, %p2109_p1 }
  0x59   : > { %2119 = shalt.err (!%p2116_p0)
}
  0x5a   : > { %s2120_s9 = scalar_lea.vmem %s2484_s3, 1536  ;;  %s2298_s10 = smov [#allocation4]  }
  0x5b   : > { %p2121_p3 = scmp.ne.s32.totalorder %s2484_s3, %s2120_s9  ;;  %s2125_s11 = sshll.u32 %s2298_s10, 4  ;;  %s2126_s11 = int_to_ptr.vmem [resolvable:$false] %s2125_s11 }
  0x5c   : > { %s2127_s29 = scalar_lea.vmem %s2126_s11, 3072  ;;  %p2128_p13 = scmp.lt.s32.totalorder %s2484_s3, %s2126_s11 }
  0x5d   : > { %p2123_p6 = pnand %p2121_p3, %p2107_p10  ;;  %p2129_p2 = scmp.lt.s32.totalorder %s2127_s29, %s2120_s9 }
  0x5f   : > { %p2124_p8 = pneg %p2123_p6  ;;  %p2130_p4 = por %p2129_p2, %p2128_p13 }
  0x61   : > { %p2131_p5 = pnand %p2130_p4, %p2124_p8 }
  0x63   : > { %2134 = shalt.err (!%p2131_p5)
}
  0x64   : > { %s2299_s6 = smov 384   ;;  %s2300_s28 = smov 24  }
  0x65   : > { %1818 = dma.hbm_to_vmem [thread:$0]  (!%p2490_p7), %s2497_s24, 1536, %s2484_s3, %s2499_s15, %s2299_s6, %s2299_s6, %s2300_s28  }
  0x66   : > { %p2761_p10 = scmp.ne.s32.totalorder %s2752_s5, 0 }
  0x67   : > { %s2530_s4 = sand.u32 (!%p2761_p10), 1, %s2269_s16   ;;  %p2762_p1 = scmp.ne.s32.totalorder (!%p2761_p10), %s2745_s27, 0 }
  0x68   : > { %215 = sbr.rel (%p2761_p10) target bundleno = 583 (0x247), region = 28  ;;  %s218_s1 = scalar_lea.sflag (!%p2761_p10), [#allocation5], %s2530_s4 }
  0x69   : > { %s1800_s8 = smul.u32 (!%p2761_p10), 96, %s2530_s4 }
  0x6b   : > { %s2534_s9 = scalar_lea.vmem (!%p2761_p10), [#allocation4], %s1800_s8 }
  0x6f   : > { %2236 = dma.done.wait (%p2762_p1), %s218_s1, 1536  }
  0x70   : > { %2238 = vsyncadd (%p2762_p1), %s218_s1, 4294965760  ;;  %p2763_p7 = scmp.ne.s32.totalorder %s2743_s25, 0 }
  0x72   : > { %2240 = dma.done.wait (%p2763_p7), [#allocation8], 3072  }
  0x73   : > { %2242 = vsyncadd (%p2763_p7), [#allocation8], 4294964224  ;;  %s250_s3 = sand.u32 1, %s2257_s13   ;;  %v1925_v0 = vld [vmem:[#allocation7 + $0x40] sm:$0xff]   ;;  %v1928_v3 = vld [vmem:[#allocation7 + $0x48] sm:$0xff]   ;;  %p948_p9 = scmp.eq.s32.totalorder %s2277_s18, 0 }
  0x74   : > { %s2547_s30 = sshll.u32 %s250_s3, 6  ;;  %v1926_v1 = vld [vmem:[#allocation7] sm:$0xff]   ;;  %1685 = vmatprep.subr.bf16.mxu0 %v1925_v0  ;;  %v1929_v4 = vld [vmem:[#allocation7 + $0x8] sm:$0xff]   ;;  %v1931_v6 = vld [vmem:[#allocation7 + $0x50] sm:$0xff]   ;;  %s1453_s25 = sshll.u32 %s2530_s4, 6 }
  0x75   : > { %v1927_v2 = vld [vmem:[#allocation7 + $0x80] sm:$0xff]   ;;  %1686 = vmatpush3.bf16.msra.mxu0 %v1926_v1  ;;  %v1930_v5 = vld [vmem:[#allocation7 + $0x88] sm:$0xff]   ;;  %v1932_v7 = vld [vmem:[#allocation7 + $0x10] sm:$0xff]   ;;  %s2575_s27 = scalar_lea.vmem [#allocation9], %s1453_s25  ;;  %s2592_s5 = scalar_lea.vmem [#allocation10], %s2547_s30 }
  0x76   : > { %1765 = vmatprep.subr.bf16.mxu1 %v1927_v2  ;;  %1687 = vmatprep.subr.bf16.mxu0 %v1928_v3  ;;  %v1933_v8 = vld [vmem:[#allocation7 + $0x90] sm:$0xff]   ;;  %v1934_v9 = vld [vmem:[#allocation7 + $0x58] sm:$0xff]   ;;  %v1937_v12 = vld [vmem:[#allocation7 + $0x60] sm:$0xff]  }
  0x77   : > { %1766 = vmatpush3.bf16.msra.mxu1 %v1927_v2  ;;  %v1935_v10 = vld [vmem:[#allocation7 + $0x18] sm:$0xff]   ;;  %v1939_v13 = vld [vmem:[#allocation7 + $0xa0] sm:$0xff]   ;;  %v1940_v15 = vld [vmem:[#allocation7 + $0x68] sm:$0xff]  }
  0x78   : > { %1767 = vmatprep.subr.bf16.mxu1 %v1930_v5  ;;  %v1936_v11 = vld [vmem:[#allocation7 + $0x98] sm:$0xff]   ;;  %v1938_v14 = vld [vmem:[#allocation7 + $0x20] sm:$0xff]   ;;  %v1942_v16 = vld [vmem:[#allocation7 + $0xa8] sm:$0xff]  }
  0x79   : > { %1688 = vmatpush3.bf16.msra.mxu0 %v1929_v4  ;;  %v1941_v17 = vld [vmem:[#allocation7 + $0x28] sm:$0xff]   ;;  %v1943_v18 = vld [vmem:[#allocation7 + $0x70] sm:$0xff]   ;;  %v1946_v21 = vld [vmem:[#allocation7 + $0x78] sm:$0xff]  }
  0x7a   : > { %1689 = vmatprep.subr.bf16.mxu0 %v1931_v6  ;;  %v1945_v19 = vld [vmem:[#allocation7 + $0xb0] sm:$0xff]   ;;  %v260_v22 = vld [vmem:[%s2534_s9 + $0x8] sm:$0xff]  ;;  %v1948_v26 = vld [vmem:[#allocation7 + $0xb8] sm:$0xff]  }
  0x7b   : > { %1768 = vmatpush3.bf16.msra.mxu1 %v1930_v5  ;;  %v1944_v20 = vld [vmem:[#allocation7 + $0x30] sm:$0xff]   ;;  %v272_v24 = vunpack.c.l.s8.bf16 %v260_v22  ;;  %v1947_v27 = vld [vmem:[#allocation7 + $0x38] sm:$0xff]   ;;  %v259_v28 = vld [vmem:[%s2534_s9] sm:$0xff]  ;;  %v275_v31 = vunpack.c.h.s8.bf16 %v260_v22 }
  0x7c   : > { %1769 = vmatprep.subr.bf16.mxu1 %v1933_v8  ;;  %v261_v23 = vld [vmem:[%s2534_s9 + $0x10] sm:$0xff]  ;;  %v271_v29 = vunpack.c.l.s8.bf16 %v259_v28  ;;  %v264_v30 = vld [vmem:[%s2534_s9 + $0x28] sm:$0xff]  ;;  %v263_v34 = vld [vmem:[%s2534_s9 + $0x20] sm:$0xff]  ;;  %v274_v35 = vunpack.c.h.s8.bf16 %v259_v28 }
  0x7d   : > { %1690 = vmatpush3.bf16.msra.mxu0 %v1932_v7  ;;  %v273_v25 = vunpack.c.l.s8.bf16 %v261_v23  ;;  %519 = vmatprep.mubr.bf16.mxu0 %v272_v24  ;;  %v276_v32 = vunpack.c.h.s8.bf16 %v261_v23  ;;  %v279_v33 = vunpack.c.l.s8.bf16 %v264_v30  ;;  %v267_v36 = vld [vmem:[%s2534_s9 + $0x40] sm:$0xff]  ;;  %v278_v37 = vunpack.c.l.s8.bf16 %v263_v34  ;;  %v262_v40 = vld [vmem:[%s2534_s9 + $0x18] sm:$0xff]  ;;  %v265_v50 = vld [vmem:[%s2534_s9 + $0x30] sm:$0xff] }
  0x7e   : > { %1691 = vmatprep.subr.bf16.mxu0 %v1934_v9  ;;  %v282_v38 = vunpack.c.h.s8.bf16 %v264_v30  ;;  %v285_v39 = vunpack.c.l.s8.bf16 %v267_v36  ;;  %v277_v41 = vunpack.c.l.s8.bf16 %v262_v40  ;;  %v270_v42 = vld [vmem:[%s2534_s9 + $0x58] sm:$0xff]  ;;  %v281_v43 = vunpack.c.h.s8.bf16 %v263_v34  ;;  %v269_v53 = vld [vmem:[%s2534_s9 + $0x50] sm:$0xff]  ;;  %v268_v56 = vld [vmem:[%s2534_s9 + $0x48] sm:$0xff] }
  0x7f   : > { %1770 = vmatpush3.bf16.msra.mxu1 %v1933_v8  ;;  %1781 = vmatprep.mubr.bf16.mxu1 %v273_v25  ;;  %v288_v44 = vunpack.c.h.s8.bf16 %v267_v36  ;;  %v291_v45 = vunpack.c.l.s8.bf16 %v270_v42  ;;  %v266_v46 = vld [vmem:[%s2534_s9 + $0x38] sm:$0xff]  ;;  %v280_v47 = vunpack.c.h.s8.bf16 %v262_v40  ;;  %v294_v49 = vunpack.c.h.s8.bf16 %v270_v42 }
  0x80   : > { %1771 = vmatprep.subr.bf16.mxu1 %v1936_v11  ;;  %v284_v48 = vunpack.c.l.s8.bf16 %v266_v46  ;;  %v283_v51 = vunpack.c.l.s8.bf16 %v265_v50  ;;  %v287_v52 = vunpack.c.h.s8.bf16 %v266_v46  ;;  %v286_v54 = vunpack.c.h.s8.bf16 %v265_v50 }
  0x81   : > { %1692 = vmatpush3.bf16.msra.mxu0 %v1935_v10  ;;  %v290_v55 = vunpack.c.l.s8.bf16 %v269_v53  ;;  %v289_v57 = vunpack.c.l.s8.bf16 %v268_v56  ;;  %v293_v58 = vunpack.c.h.s8.bf16 %v269_v53  ;;  %v292_v59 = vunpack.c.h.s8.bf16 %v268_v56 }
  0x82   : > { %1693 = vmatprep.subr.bf16.mxu0 %v1937_v12 }
  0x83   : > { %1772 = vmatpush3.bf16.msra.mxu1 %v1936_v11 }
  0x84   : > { %1773 = vmatprep.subr.bf16.mxu1 %v1939_v13 }
  0x85   : > { %1694 = vmatpush3.bf16.msra.mxu0 %v1938_v14 }
  0x86   : > { %1695 = vmatprep.subr.bf16.mxu0 %v1940_v15 }
  0x87   : > { %1774 = vmatpush3.bf16.msra.mxu1 %v1939_v13 }
  0x88   : > { %1775 = vmatprep.subr.bf16.mxu1 %v1942_v16 }
  0x89   : > { %1696 = vmatpush3.bf16.msra.mxu0 %v1941_v17 }
  0x8a   : > { %1697 = vmatprep.subr.bf16.mxu0 %v1943_v18 }
  0x8b   : > { %1776 = vmatpush3.bf16.msra.mxu1 %v1942_v16 }
  0x8c   : > { %1777 = vmatprep.subr.bf16.mxu1 %v1945_v19 }
  0x8d   : > { %1698 = vmatpush3.bf16.msra.mxu0 %v1944_v20 }
  0x8e   : > { %1699 = vmatprep.subr.bf16.mxu0 %v1946_v21 }
  0x8f   : > { %1778 = vmatpush3.bf16.msra.mxu1 %v1945_v19 }
  0x90   : > { %1779 = vmatprep.subr.bf16.mxu1 %v1948_v26 }
  0x91   : > { %1700 = vmatpush3.bf16.msra.mxu0 %v1947_v27 }
  0x93   : > { %1780 = vmatpush3.bf16.msra.mxu1 %v1948_v26 }
  0x94   : > { %520 = vmatmul.mubr.bf16.vlgmr.msra.gmra.mrb[0].mxu0 %v271_v29 }
  0x95   : > { %527 = vmatprep.mubr.bf16.mxu0 %v275_v31 }
  0x96   : > { %1782 = vmatmul.mubr.bf16.vlgmr.msra.gmra.mrb[0].mxu1 %v276_v32 }
  0x97   : > { %1785 = vmatprep.mubr.bf16.mxu1 %v279_v33 }
  0x9c   : > { %528 = vmatmul.mubr.bf16.gmra.mrb[4].mxu0 %v274_v35 }
  0x9d   : > { %535 = vmatprep.mubr.bf16.mxu0 %v278_v37 }
  0x9e   : > { %1786 = vmatmul.mubr.bf16.gmra.mrb[4].mxu1 %v282_v38 }
  0x9f   : > { %1789 = vmatprep.mubr.bf16.mxu1 %v285_v39 }
  0xa4   : > { %536 = vmatmul.mubr.bf16.gmra.mrb[8].mxu0 %v277_v41 }
  0xa5   : > { %543 = vmatprep.mubr.bf16.mxu0 %v281_v43 }
  0xa6   : > { %1790 = vmatmul.mubr.bf16.gmra.mrb[8].mxu1 %v288_v44 }
  0xa7   : > { %1793 = vmatprep.mubr.bf16.mxu1 %v291_v45 }
  0xac   : > { %544 = vmatmul.mubr.bf16.gmra.mrb[12].mxu0 %v280_v47 }
  0xad   : > { %551 = vmatprep.mubr.bf16.mxu0 %v284_v48 }
  0xae   : > { %1794 = vmatmul.mubr.bf16.gmra.mrb[12].mxu1 %v294_v49 }
  0xb4   : > { %552 = vmatmul.mubr.bf16.gmra.mrb[16].mxu0 %v283_v51 }
  0xb5   : > { %559 = vmatprep.mubr.bf16.mxu0 %v287_v52 }
  0xbc   : > { %560 = vmatmul.mubr.bf16.gmra.mrb[20].mxu0 %v286_v54 }
  0xbd   : > { %567 = vmatprep.mubr.bf16.mxu0 %v290_v55 }
  0xc4   : > { %568 = vmatmul.mubr.bf16.gmra.mrb[24].mxu0 %v289_v57 }
  0xc5   : > { %575 = vmatprep.mubr.bf16.mxu0 %v293_v58 }
  0xcc   : > { %576 = vmatmul.mubr.bf16.gmra.mrb[28].mxu0 %v292_v59 }
 0x167   : > { %v1701_v60 = vpop.f32.mrb[0].mxu0 }
 0x168   : > { %v1702_v61 = vpop.f32.mrb[1].mxu0 }
 0x169   : > { %v1703_v62 = vadd.f32 %v1702_v61, %v1701_v60  ;;  %v1704_v63 = vpop.f32.mrb[2].mxu0  ;;  %v1783_v0 = vpop.f32.mrb[0].mxu1 }
 0x16a   : > { %v1705_v1 = vpop.f32.mrb[3].mxu0  ;;  %v618_v2 = vpop.f32.mrb[1].mxu1 }
 0x16b   : > { %v1706_v3 = vadd.f32 %v1705_v1, %v1704_v63  ;;  %v619_v4 = vadd.f32 %v1703_v62, %v618_v2  ;;  %v1784_v5 = vpop.f32.mrb[2].mxu1 }
 0x16c   : > { %v621_v6 = vpop.f32.mrb[3].mxu1 }
 0x16d   : > { %685 = vst [vmem:[#allocation2] sm:$0xff] %v619_v4  ;;  %v1479_v7 = vmul.f32 -1.442695, %v619_v4  ;;  %v622_v8 = vadd.f32 %v1706_v3, %v621_v6 }
 0x16f   : > { %1949 = vpow2.f32 %v1479_v7  ;;  %686 = vst [vmem:[#allocation2 + $0x8] sm:$0xff] %v622_v8  ;;  %v1480_v9 = vmul.f32 -1.442695, %v622_v8  ;;  %v1707_v10 = vpop.f32.mrb[4].mxu0 }
 0x170   : > { %v1708_v11 = vpop.f32.mrb[5].mxu0 }
 0x171   : > { %1951 = vpow2.f32 %v1480_v9  ;;  %v1709_v12 = vadd.f32 %v1708_v11, %v1707_v10  ;;  %v1710_v13 = vpop.f32.mrb[6].mxu0  ;;  %v1787_v14 = vpop.f32.mrb[4].mxu1 }
 0x172   : > { %v1711_v15 = vpop.f32.mrb[7].mxu0  ;;  %v634_v16 = vpop.f32.mrb[5].mxu1 }
 0x173   : > { %v627_v17 = vadd.f32 %v1783_v0, %v1709_v12  ;;  %v1712_v18 = vadd.f32 %v1711_v15, %v1710_v13  ;;  %v1788_v19 = vpop.f32.mrb[6].mxu1 }
 0x174   : > { %v637_v20 = vpop.f32.mrb[7].mxu1 }
 0x175   : > { %687 = vst [vmem:[#allocation2 + $0x10] sm:$0xff] %v627_v17  ;;  %v1481_v21 = vmul.f32 -1.442695, %v627_v17  ;;  %v630_v22 = vadd.f32 %v1784_v5, %v1712_v18 }
 0x177   : > { %1953 = vpow2.f32 %v1481_v21  ;;  %688 = vst [vmem:[#allocation2 + $0x18] sm:$0xff] %v630_v22  ;;  %v1482_v23 = vmul.f32 -1.442695, %v630_v22  ;;  %v1713_v24 = vpop.f32.mrb[8].mxu0 }
 0x178   : > { %v1714_v25 = vpop.f32.mrb[9].mxu0 }
 0x179   : > { %v1950_v26 = vpop.eup %1949  ;;  %1955 = vpow2.f32 %v1482_v23  ;;  %v1715_v27 = vadd.f32 %v1714_v25, %v1713_v24  ;;  %v1716_v28 = vpop.f32.mrb[10].mxu0 }
 0x17a   : > { %v2562_v29 = vpop.f32.mrb[8].mxu1  ;;  %v820_v30 = vadd.f32 1.0, %v1950_v26  ;;  %v1717_v31 = vpop.f32.mrb[11].mxu0 }
 0x17b   : > { %v650_v32 = vpop.f32.mrb[9].mxu1  ;;  %v1952_v33 = vpop.eup %1951  ;;  %v1718_v34 = vadd.f32 %v1717_v31, %v1716_v28  ;;  %v635_v35 = vadd.f32 %v1715_v27, %v634_v16 }
 0x17c   : > { %v2564_v36 = vpop.f32.mrb[10].mxu1  ;;  %v821_v37 = vadd.f32 1.0, %v1952_v33  ;;  %1957 = vrcp.f32 %v820_v30 }
 0x17d   : > { %v653_v38 = vpop.f32.mrb[11].mxu1  ;;  %689 = vst [vmem:[#allocation2 + $0x20] sm:$0xff] %v635_v35  ;;  %v1483_v39 = vmul.f32 -1.442695, %v635_v35  ;;  %v638_v40 = vadd.f32 %v1718_v34, %v637_v20 }
 0x17e   : > { %1959 = vrcp.f32 %v821_v37 }
 0x17f   : > { %1961 = vpow2.f32 %v1483_v39  ;;  %690 = vst [vmem:[#allocation2 + $0x28] sm:$0xff] %v638_v40  ;;  %v1484_v41 = vmul.f32 -1.442695, %v638_v40  ;;  %v1719_v42 = vpop.f32.mrb[12].mxu0 }
 0x180   : > { %v1720_v43 = vpop.f32.mrb[13].mxu0 }
 0x181   : > { %v1954_v44 = vpop.eup %1953  ;;  %1963 = vpow2.f32 %v1484_v41  ;;  %v1721_v45 = vadd.f32 %v1720_v43, %v1719_v42  ;;  %v1722_v46 = vpop.f32.mrb[14].mxu0 }
 0x182   : > { %v2566_v47 = vpop.f32.mrb[12].mxu1  ;;  %v822_v48 = vadd.f32 1.0, %v1954_v44  ;;  %v1723_v49 = vpop.f32.mrb[15].mxu0 }
 0x183   : > { %v2568_v50 = vpop.f32.mrb[13].mxu1  ;;  %v1956_v51 = vpop.eup %1955  ;;  %v643_v52 = vadd.f32 %v1787_v14, %v1721_v45  ;;  %v1724_v53 = vadd.f32 %v1723_v49, %v1722_v46 }
 0x184   : > { %v2570_v54 = vpop.f32.mrb[14].mxu1  ;;  %v823_v55 = vadd.f32 1.0, %v1956_v51  ;;  %1965 = vrcp.f32 %v822_v48 }
 0x185   : > { %v2572_v56 = vpop.f32.mrb[15].mxu1  ;;  %691 = vst [vmem:[#allocation2 + $0x30] sm:$0xff] %v643_v52  ;;  %v1485_v57 = vmul.f32 -1.442695, %v643_v52  ;;  %v646_v58 = vadd.f32 %v1788_v19, %v1724_v53 }
 0x186   : > { %1967 = vrcp.f32 %v823_v55  ;;  %v1958_v59 = vpop.eup %1957 }
 0x187   : > { %1969 = vpow2.f32 %v1485_v57  ;;  %692 = vst [vmem:[#allocation2 + $0x38] sm:$0xff] %v646_v58  ;;  %v1486_v60 = vmul.f32 -1.442695, %v646_v58  ;;  %v1725_v61 = vpop.f32.mrb[16].mxu0 }
 0x188   : > { %v1960_v62 = vpop.eup %1959  ;;  %v1726_v63 = vpop.f32.mrb[17].mxu0 }
 0x189   : > { %v1962_v0 = vpop.eup %1961  ;;  %v1594_v1 = vpack.c.bf16 %v1960_v62, %v1958_v59  ;;  %1971 = vpow2.f32 %v1486_v60  ;;  %v1727_v2 = vadd.f32 %v1726_v63, %v1725_v61  ;;  %v1728_v3 = vpop.f32.mrb[18].mxu0 }
 0x18a   : > { %v824_v4 = vadd.f32 1.0, %v1962_v0  ;;  %v1729_v5 = vpop.f32.mrb[19].mxu0 }
 0x18b   : > { %v1964_v6 = vpop.eup %1963  ;;  %1595 = vst [vmem:[%s2575_s27] sm:$0xff] %v1594_v1   ;;  %v1730_v7 = vadd.f32 %v1729_v5, %v1728_v3  ;;  %v651_v8 = vadd.f32 %v1727_v2, %v650_v32 }
 0x18c   : > { %v825_v9 = vadd.f32 1.0, %v1964_v6  ;;  %1973 = vrcp.f32 %v824_v4 }
 0x18d   : > { %693 = vst [vmem:[#allocation2 + $0x40] sm:$0xff] %v651_v8  ;;  %v1487_v10 = vmul.f32 -1.442695, %v651_v8  ;;  %v654_v11 = vadd.f32 %v1730_v7, %v653_v38 }
 0x18e   : > { %1975 = vrcp.f32 %v825_v9  ;;  %v1966_v12 = vpop.eup %1965 }
 0x18f   : > { %1977 = vpow2.f32 %v1487_v10  ;;  %694 = vst [vmem:[#allocation2 + $0x48] sm:$0xff] %v654_v11  ;;  %v1488_v13 = vmul.f32 -1.442695, %v654_v11  ;;  %v1731_v14 = vpop.f32.mrb[20].mxu0 }
 0x190   : > { %v1968_v15 = vpop.eup %1967  ;;  %v1732_v16 = vpop.f32.mrb[21].mxu0 }
 0x191   : > { %v1970_v17 = vpop.eup %1969  ;;  %v1599_v18 = vpack.c.bf16 %v1968_v15, %v1966_v12  ;;  %1979 = vpow2.f32 %v1488_v13  ;;  %v1733_v19 = vadd.f32 %v1732_v16, %v1731_v14  ;;  %v1734_v20 = vpop.f32.mrb[22].mxu0 }
 0x192   : > { %v826_v21 = vadd.f32 1.0, %v1970_v17  ;;  %v1735_v22 = vpop.f32.mrb[23].mxu0 }
 0x193   : > { %v1972_v23 = vpop.eup %1971  ;;  %1671 = vst [vmem:[%s2575_s27 + $0x8] sm:$0xff] %v1599_v18   ;;  %v659_v24 = vadd.f32 %v2562_v29, %v1733_v19  ;;  %v1736_v25 = vadd.f32 %v1735_v22, %v1734_v20  ;;  %v953_v20 = vld [vmem:[#allocation2] sm:$0xff] (%p948_p9)  ;;  %v955_v22 = vld [vmem:[#allocation2 + $0x10] sm:$0xff] (%p948_p9) }
 0x194   : > { %v827_v26 = vadd.f32 1.0, %v1972_v23  ;;  %1981 = vrcp.f32 %v826_v21  ;;  %v954_v21 = vld [vmem:[#allocation2 + $0x8] sm:$0xff] (%p948_p9)  ;;  %969 = vst [vmem:[#allocation3] sm:$0xff] (%p948_p9), %v953_v20  ;;  %971 = vst [vmem:[#allocation3 + $0x10] sm:$0xff] (%p948_p9), %v955_v22  ;;  %v956_v23 = vld [vmem:[#allocation2 + $0x18] sm:$0xff] (%p948_p9) }
 0x195   : > { %695 = vst [vmem:[#allocation2 + $0x50] sm:$0xff] %v659_v24  ;;  %v1489_v27 = vmul.f32 -1.442695, %v659_v24  ;;  %v662_v28 = vadd.f32 %v2564_v36, %v1736_v25  ;;  %970 = vst [vmem:[#allocation3 + $0x8] sm:$0xff] (%p948_p9), %v954_v21  ;;  %v957_v24 = vld [vmem:[#allocation2 + $0x20] sm:$0xff] (%p948_p9)  ;;  %v958_v25 = vld [vmem:[#allocation2 + $0x28] sm:$0xff] (%p948_p9) }
 0x196   : > { %1983 = vrcp.f32 %v827_v26  ;;  %v1974_v30 = vpop.eup %1973  ;;  %972 = vst [vmem:[#allocation3 + $0x18] sm:$0xff] (%p948_p9), %v956_v23  ;;  %973 = vst [vmem:[#allocation3 + $0x20] sm:$0xff] (%p948_p9), %v957_v24  ;;  %v959_v26 = vld [vmem:[#allocation2 + $0x30] sm:$0xff] (%p948_p9) }
 0x197   : > { %1985 = vpow2.f32 %v1489_v27  ;;  %696 = vst [vmem:[#allocation2 + $0x58] sm:$0xff] %v662_v28  ;;  %v1490_v31 = vmul.f32 -1.442695, %v662_v28  ;;  %v1737_v32 = vpop.f32.mrb[24].mxu0  ;;  %974 = vst [vmem:[#allocation3 + $0x28] sm:$0xff] (%p948_p9), %v958_v25  ;;  %v960_v27 = vld [vmem:[#allocation2 + $0x38] sm:$0xff] (%p948_p9) }
 0x198   : > { %v1976_v33 = vpop.eup %1975  ;;  %v1738_v34 = vpop.f32.mrb[25].mxu0  ;;  %v961_v28 = vld [vmem:[#allocation2 + $0x40] sm:$0xff] (%p948_p9)  ;;  %975 = vst [vmem:[#allocation3 + $0x30] sm:$0xff] (%p948_p9), %v959_v26  ;;  %976 = vst [vmem:[#allocation3 + $0x38] sm:$0xff] (%p948_p9), %v960_v27 }
 0x199   : > { %v1978_v35 = vpop.eup %1977  ;;  %v1604_v37 = vpack.c.bf16 %v1976_v33, %v1974_v30  ;;  %1987 = vpow2.f32 %v1490_v31  ;;  %v1739_v29 = vadd.f32 %v1738_v34, %v1737_v32  ;;  %v1740_v38 = vpop.f32.mrb[26].mxu0  ;;  %977 = vst [vmem:[#allocation3 + $0x40] sm:$0xff] (%p948_p9), %v961_v28  ;;  %v962_v30 = vld [vmem:[#allocation2 + $0x48] sm:$0xff] (%p948_p9) }
 0x19a   : > { %v828_v39 = vadd.f32 1.0, %v1978_v35  ;;  %v1741_v40 = vpop.f32.mrb[27].mxu0  ;;  %978 = vst [vmem:[#allocation3 + $0x48] sm:$0xff] (%p948_p9), %v962_v30 }
 0x19b   : > { %v1980_v41 = vpop.eup %1979  ;;  %1672 = vst [vmem:[%s2575_s27 + $0x10] sm:$0xff] %v1604_v37   ;;  %v1742_v42 = vadd.f32 %v1741_v40, %v1740_v38  ;;  %v667_v36 = vadd.f32 %v1739_v29, %v2568_v50 }
 0x19c   : > { %v829_v43 = vadd.f32 1.0, %v1980_v41  ;;  %1989 = vrcp.f32 %v828_v39  ;;  %v963_v31 = vld [vmem:[#allocation2 + $0x50] sm:$0xff] (%p948_p9) }
 0x19d   : > { %697 = vst [vmem:[#allocation2 + $0x60] sm:$0xff] %v667_v36  ;;  %v1491_v44 = vmul.f32 -1.442695, %v667_v36  ;;  %v670_v45 = vadd.f32 %v1742_v42, %v2572_v56  ;;  %979 = vst [vmem:[#allocation3 + $0x50] sm:$0xff] (%p948_p9), %v963_v31 }
 0x19e   : > { %1991 = vrcp.f32 %v829_v43  ;;  %v1982_v46 = vpop.eup %1981  ;;  %v964_v32 = vld [vmem:[#allocation2 + $0x58] sm:$0xff] (%p948_p9) }
 0x19f   : > { %1993 = vpow2.f32 %v1491_v44  ;;  %698 = vst [vmem:[#allocation2 + $0x68] sm:$0xff] %v670_v45  ;;  %v1492_v48 = vmul.f32 -1.442695, %v670_v45  ;;  %v1743_v49 = vpop.f32.mrb[28].mxu0  ;;  %980 = vst [vmem:[#allocation3 + $0x58] sm:$0xff] (%p948_p9), %v964_v32 }
 0x1a0   : > { %v1984_v51 = vpop.eup %1983  ;;  %v1744_v52 = vpop.f32.mrb[29].mxu0 }
 0x1a1   : > { %v1986_v53 = vpop.eup %1985  ;;  %v1609_v55 = vpack.c.bf16 %v1984_v51, %v1982_v46  ;;  %1995 = vpow2.f32 %v1492_v48  ;;  %v1745_v57 = vadd.f32 %v1744_v52, %v1743_v49  ;;  %v1746_v50 = vpop.f32.mrb[30].mxu0 }
 0x1a2   : > { %v830_v58 = vadd.f32 1.0, %v1986_v53  ;;  %v1747_v59 = vpop.f32.mrb[31].mxu0 }
 0x1a3   : > { %v1988_v60 = vpop.eup %1987  ;;  %1673 = vst [vmem:[%s2575_s27 + $0x18] sm:$0xff] %v1609_v55   ;;  %v675_v56 = vadd.f32 %v2566_v47, %v1745_v57  ;;  %v1748_v61 = vadd.f32 %v1747_v59, %v1746_v50 }
 0x1a4   : > { %v831_v62 = vadd.f32 1.0, %v1988_v60  ;;  %1997 = vrcp.f32 %v830_v58  ;;  %v965_v33 = vld [vmem:[#allocation2 + $0x60] sm:$0xff] (%p948_p9) }
 0x1a5   : > { %699 = vst [vmem:[#allocation2 + $0x70] sm:$0xff] %v675_v56  ;;  %v1493_v63 = vmul.f32 -1.442695, %v675_v56  ;;  %v678_v0 = vadd.f32 %v2570_v54, %v1748_v61  ;;  %981 = vst [vmem:[#allocation3 + $0x60] sm:$0xff] (%p948_p9), %v965_v33 }
 0x1a6   : > { %1999 = vrcp.f32 %v831_v62  ;;  %v1990_v1 = vpop.eup %1989  ;;  %v966_v34 = vld [vmem:[#allocation2 + $0x68] sm:$0xff] (%p948_p9) }
 0x1a7   : > { %2001 = vpow2.f32 %v1493_v63  ;;  %700 = vst [vmem:[#allocation2 + $0x78] sm:$0xff] %v678_v0  ;;  %v1494_v2 = vmul.f32 -1.442695, %v678_v0  ;;  %982 = vst [vmem:[#allocation3 + $0x68] sm:$0xff] (%p948_p9), %v966_v34 }
 0x1a8   : > { %v1992_v3 = vpop.eup %1991 }
 0x1a9   : > { %v1994_v4 = vpop.eup %1993  ;;  %v1614_v5 = vpack.c.bf16 %v1992_v3, %v1990_v1  ;;  %2003 = vpow2.f32 %v1494_v2 }
 0x1aa   : > { %v832_v6 = vadd.f32 1.0, %v1994_v4 }
 0x1ab   : > { %v1996_v47 = vpop.eup %1995  ;;  %1674 = vst [vmem:[%s2575_s27 + $0x20] sm:$0xff] %v1614_v5  }
 0x1ac   : > { %v833_v7 = vadd.f32 1.0, %v1996_v47  ;;  %2005 = vrcp.f32 %v832_v6  ;;  %v967_v35 = vld [vmem:[#allocation2 + $0x70] sm:$0xff] (%p948_p9) }
 0x1ad   : > { %983 = vst [vmem:[#allocation3 + $0x70] sm:$0xff] (%p948_p9), %v967_v35 }
 0x1ae   : > { %2007 = vrcp.f32 %v833_v7  ;;  %v1998_v8 = vpop.eup %1997  ;;  %v968_v37 = vld [vmem:[#allocation2 + $0x78] sm:$0xff] (%p948_p9) }
 0x1af   : > { %984 = vst [vmem:[#allocation3 + $0x78] sm:$0xff] (%p948_p9), %v968_v37 }
 0x1b0   : > { %v2000_v9 = vpop.eup %1999 }
 0x1b1   : > { %v2002_v54 = vpop.eup %2001  ;;  %v1619_v10 = vpack.c.bf16 %v2000_v9, %v1998_v8 }
 0x1b2   : > { %v834_v11 = vadd.f32 1.0, %v2002_v54 }
 0x1b3   : > { %v2004_v12 = vpop.eup %2003  ;;  %1675 = vst [vmem:[%s2575_s27 + $0x28] sm:$0xff] %v1619_v10  }
 0x1b4   : > { %v835_v13 = vadd.f32 1.0, %v2004_v12  ;;  %2009 = vrcp.f32 %v834_v11 }
 0x1b6   : > { %2011 = vrcp.f32 %v835_v13  ;;  %v2006_v14 = vpop.eup %2005 }
 0x1b8   : > { %v2008_v15 = vpop.eup %2007 }
 0x1b9   : > { %v1624_v16 = vpack.c.bf16 %v2008_v15, %v2006_v14 }
 0x1bb   : > { %1676 = vst [vmem:[%s2575_s27 + $0x30] sm:$0xff] %v1624_v16  }
 0x1bd   : > { %952 = sbr.rel (!%p948_p9) target bundleno = 452 (0x1c4), region = 52 }
 0x1be   : > { %v2010_v17 = vpop.eup %2009 }
 0x1c0   : > { %v2012_v18 = vpop.eup %2011 }
 0x1c1   : > { %v1629_v19 = vpack.c.bf16 %v2012_v18, %v2010_v17 }
 0x1c3   : > { %1677 = vst [vmem:[%s2575_s27 + $0x38] sm:$0xff] %v1629_v19  }
 0x1c4 PF: > { %p985_p11 = scmp.ne.s32.totalorder %s2277_s18, 0 }
 0x1c5   : > { %v990_v29 = vld [vmem:[#allocation3] sm:$0xff] (%p985_p11)  ;;  %v991_v39 = vld [vmem:[#allocation3 + $0x8] sm:$0xff] (%p985_p11)  ;;  %v992_v42 = vld [vmem:[#allocation3 + $0x10] sm:$0xff] (%p985_p11) }
 0x1c6   : > { %989 = sbr.rel (!%p985_p11) target bundleno = 469 (0x1d5), region = 56  ;;  %v1006_v38 = vld [vmem:[#allocation2] sm:$0xff] (%p985_p11)  ;;  %v1007_v41 = vld [vmem:[#allocation2 + $0x8] sm:$0xff] (%p985_p11)  ;;  %v1008_v36 = vld [vmem:[#allocation2 + $0x10] sm:$0xff] (%p985_p11) }
 0x1c7   : > { %v1022_v40 = vadd.f32 (%p985_p11), %v1006_v38, %v990_v29  ;;  %v1023_v43 = vadd.f32 (%p985_p11), %v1007_v41, %v991_v39  ;;  %v1024_v44 = vadd.f32 (%p985_p11), %v1008_v36, %v992_v42  ;;  %v993_v45 = vld [vmem:[#allocation3 + $0x18] sm:$0xff] (%p985_p11)  ;;  %v994_v48 = vld [vmem:[#allocation3 + $0x20] sm:$0xff] (%p985_p11)  ;;  %v995_v52 = vld [vmem:[#allocation3 + $0x28] sm:$0xff] (%p985_p11) }
 0x1c8   : > { %v1009_v46 = vld [vmem:[#allocation2 + $0x18] sm:$0xff] (%p985_p11)  ;;  %v1010_v51 = vld [vmem:[#allocation2 + $0x20] sm:$0xff] (%p985_p11)  ;;  %v1011_v53 = vld [vmem:[#allocation2 + $0x28] sm:$0xff] (%p985_p11) }
 0x1c9   : > { %1038 = vst [vmem:[#allocation3] sm:$0xff] (%p985_p11), %v1022_v40  ;;  %v1025_v49 = vadd.f32 (%p985_p11), %v1009_v46, %v993_v45  ;;  %1039 = vst [vmem:[#allocation3 + $0x8] sm:$0xff] (%p985_p11), %v1023_v43  ;;  %v1026_v55 = vadd.f32 (%p985_p11), %v1010_v51, %v994_v48  ;;  %v1027_v57 = vadd.f32 (%p985_p11), %v1011_v53, %v995_v52  ;;  %v996_v50 = vld [vmem:[#allocation3 + $0x30] sm:$0xff] (%p985_p11)  ;;  %v997_v59 = vld [vmem:[#allocation3 + $0x38] sm:$0xff] (%p985_p11) }
 0x1ca   : > { %1040 = vst [vmem:[#allocation3 + $0x10] sm:$0xff] (%p985_p11), %v1024_v44  ;;  %v1012_v58 = vld [vmem:[#allocation2 + $0x30] sm:$0xff] (%p985_p11)  ;;  %v1013_v56 = vld [vmem:[#allocation2 + $0x38] sm:$0xff] (%p985_p11)  ;;  %v998_v61 = vld [vmem:[#allocation3 + $0x40] sm:$0xff] (%p985_p11) }
 0x1cb   : > { %1041 = vst [vmem:[#allocation3 + $0x18] sm:$0xff] (%p985_p11), %v1025_v49  ;;  %v1028_v60 = vadd.f32 (%p985_p11), %v1012_v58, %v996_v50  ;;  %v1014_v62 = vld [vmem:[#allocation2 + $0x40] sm:$0xff] (%p985_p11)  ;;  %1042 = vst [vmem:[#allocation3 + $0x20] sm:$0xff] (%p985_p11), %v1026_v55  ;;  %v1029_v63 = vadd.f32 (%p985_p11), %v1013_v56, %v997_v59  ;;  %v999_v1 = vld [vmem:[#allocation3 + $0x48] sm:$0xff] (%p985_p11) }
 0x1cc   : > { %1043 = vst [vmem:[#allocation3 + $0x28] sm:$0xff] (%p985_p11), %v1027_v57  ;;  %v1030_v0 = vadd.f32 (%p985_p11), %v1014_v62, %v998_v61  ;;  %v1015_v2 = vld [vmem:[#allocation2 + $0x48] sm:$0xff] (%p985_p11)  ;;  %v1000_v3 = vld [vmem:[#allocation3 + $0x50] sm:$0xff] (%p985_p11)  ;;  %v1001_v6 = vld [vmem:[#allocation3 + $0x58] sm:$0xff] (%p985_p11) }
 0x1cd   : > { %1044 = vst [vmem:[#allocation3 + $0x30] sm:$0xff] %v1028_v60  ;;  %v1031_v4 = vadd.f32 %v1015_v2, %v999_v1  ;;  %v1016_v5 = vld [vmem:[#allocation2 + $0x50] sm:$0xff]  ;;  %v1017_v47 = vld [vmem:[#allocation2 + $0x58] sm:$0xff]  ;;  %1045 = vst [vmem:[#allocation3 + $0x38] sm:$0xff] %v1029_v63 }
 0x1ce   : > { %1046 = vst [vmem:[#allocation3 + $0x40] sm:$0xff] %v1030_v0  ;;  %v1032_v7 = vadd.f32 %v1016_v5, %v1000_v3  ;;  %v1033_v8 = vadd.f32 %v1017_v47, %v1001_v6  ;;  %v1002_v9 = vld [vmem:[#allocation3 + $0x60] sm:$0xff]  ;;  %v1003_v10 = vld [vmem:[#allocation3 + $0x68] sm:$0xff]  ;;  %v1004_v13 = vld [vmem:[#allocation3 + $0x70] sm:$0xff] }
 0x1cf   : > { %v1018_v54 = vld [vmem:[#allocation2 + $0x60] sm:$0xff]  ;;  %1047 = vst [vmem:[#allocation3 + $0x48] sm:$0xff] %v1031_v4  ;;  %v1019_v12 = vld [vmem:[#allocation2 + $0x68] sm:$0xff]  ;;  %v1020_v14 = vld [vmem:[#allocation2 + $0x70] sm:$0xff] }
 0x1d0   : > { %v1034_v11 = vadd.f32 %v1018_v54, %v1002_v9  ;;  %1048 = vst [vmem:[#allocation3 + $0x50] sm:$0xff] %v1032_v7  ;;  %1049 = vst [vmem:[#allocation3 + $0x58] sm:$0xff] %v1033_v8  ;;  %v1035_v15 = vadd.f32 %v1019_v12, %v1003_v10  ;;  %v1036_v16 = vadd.f32 %v1020_v14, %v1004_v13  ;;  %v1005_v17 = vld [vmem:[#allocation3 + $0x78] sm:$0xff] }
 0x1d1   : > { %v1021_v18 = vld [vmem:[#allocation2 + $0x78] sm:$0xff] }
 0x1d2   : > { %1050 = vst [vmem:[#allocation3 + $0x60] sm:$0xff] %v1034_v11  ;;  %v1037_v19 = vadd.f32 %v1021_v18, %v1005_v17  ;;  %1051 = vst [vmem:[#allocation3 + $0x68] sm:$0xff] %v1035_v15 }
 0x1d3   : > { %1052 = vst [vmem:[#allocation3 + $0x70] sm:$0xff] %v1036_v16 }
 0x1d4   : > { %1053 = vst [vmem:[#allocation3 + $0x78] sm:$0xff] %v1037_v19 }
 0x1d5 PF: > { %p1054_p0 = scmp.eq.s32.totalorder %s2277_s18, 2 }
 0x1d6   : > { %v1067_v41 = vld [vmem:[#allocation3 + $0x40] sm:$0xff] (%p1054_p0)  ;;  %v1068_v43 = vld [vmem:[#allocation3 + $0x48] sm:$0xff] (%p1054_p0) }
 0x1d7   : > { %1058 = sbr.rel (!%p1054_p0) target bundleno = 531 (0x213), region = 60  ;;  %v1069_v44 = vld [vmem:[#allocation3 + $0x50] sm:$0xff] (%p1054_p0)  ;;  %v1522_v46 = vmul.f32 (%p1054_p0), -0.33333334, %v1067_v41  ;;  %v1523_v48 = vmul.f32 (%p1054_p0), -0.33333334, %v1068_v43 }
 0x1d8   : > { %v1059_v20 = vld [vmem:[#allocation3] sm:$0xff] (%p1054_p0)  ;;  %v1060_v21 = vld [vmem:[#allocation3 + $0x8] sm:$0xff] (%p1054_p0)  ;;  %v1070_v51 = vld [vmem:[#allocation3 + $0x58] sm:$0xff] (%p1054_p0)  ;;  %v1524_v52 = vmul.f32 (%p1054_p0), -0.33333334, %v1069_v44 }
 0x1d9   : > { %v1061_v22 = vld [vmem:[#allocation3 + $0x10] sm:$0xff] (%p1054_p0)  ;;  %v1514_v23 = vmul.f32 (%p1054_p0), -0.33333334, %v1059_v20  ;;  %v1515_v24 = vmul.f32 (%p1054_p0), -0.33333334, %v1060_v21  ;;  %v1071_v53 = vld [vmem:[#allocation3 + $0x60] sm:$0xff] (%p1054_p0) }
 0x1da   : > { %v1062_v25 = vld [vmem:[#allocation3 + $0x18] sm:$0xff] (%p1054_p0)  ;;  %v1063_v26 = vld [vmem:[#allocation3 + $0x20] sm:$0xff] (%p1054_p0)  ;;  %v1516_v27 = vmul.f32 (%p1054_p0), -0.33333334, %v1061_v22  ;;  %v1123_v55 = vmul.f32 (%p1054_p0), 1.442695, %v1522_v46 }
 0x1db   : > { %v1517_v28 = vmul.f32 (%p1054_p0), -0.33333334, %v1062_v25  ;;  %v1064_v30 = vld [vmem:[#allocation3 + $0x28] sm:$0xff] (%p1054_p0)  ;;  %v1107_v32 = vmul.f32 (%p1054_p0), 1.442695, %v1514_v23  ;;  %v1073_v54 = vld [vmem:[#allocation3 + $0x70] sm:$0xff] (%p1054_p0) }
 0x1dc   : > { %v1065_v31 = vld [vmem:[#allocation3 + $0x30] sm:$0xff] (%p1054_p0)  ;;  %v1109_v33 = vmul.f32 (%p1054_p0), 1.442695, %v1515_v24  ;;  %v1518_v34 = vmul.f32 (%p1054_p0), -0.33333334, %v1063_v26  ;;  %v1066_v39 = vld [vmem:[#allocation3 + $0x38] sm:$0xff] (%p1054_p0) }
 0x1dd   : > { %v1111_v35 = vmul.f32 (%p1054_p0), 1.442695, %v1516_v27  ;;  %v1113_v37 = vmul.f32 (%p1054_p0), 1.442695, %v1517_v28  ;;  %v1519_v29 = vmul.f32 (%p1054_p0), -0.33333334, %v1064_v30  ;;  %2013 = vpow2.f32 (%p1054_p0), %v1107_v32 }
 0x1de   : > { %v1115_v38 = vmul.f32 1.442695, %v1518_v34  ;;  %v1520_v40 = vmul.f32 -0.33333334, %v1065_v31  ;;  %2015 = vpow2.f32 %v1109_v33  ;;  %v1521_v36 = vmul.f32 -0.33333334, %v1066_v39 }
 0x1df   : > { %v1117_v42 = vmul.f32 1.442695, %v1519_v29  ;;  %2017 = vpow2.f32 %v1111_v35  ;;  %v1525_v57 = vmul.f32 -0.33333334, %v1070_v51  ;;  %v1125_v50 = vmul.f32 1.442695, %v1523_v48 }
 0x1e0   : > { %v1119_v45 = vmul.f32 1.442695, %v1520_v40  ;;  %2019 = vpow2.f32 %v1113_v37  ;;  %v1121_v49 = vmul.f32 1.442695, %v1521_v36  ;;  %v1526_v58 = vmul.f32 -0.33333334, %v1071_v53 }
 0x1e1   : > { %2021 = vpow2.f32 %v1115_v38  ;;  %v1127_v59 = vmul.f32 1.442695, %v1524_v52  ;;  %v1129_v60 = vmul.f32 1.442695, %v1525_v57  ;;  %v1072_v6 = vld [vmem:[#allocation3 + $0x68] sm:$0xff]  ;;  %v1074_v13 = vld [vmem:[#allocation3 + $0x78] sm:$0xff] }
 0x1e2   : > { %2023 = vpow2.f32 %v1117_v42  ;;  %v1131_v56 = vmul.f32 1.442695, %v1526_v58  ;;  %v1527_v12 = vmul.f32 -0.33333334, %v1072_v6  ;;  %v1528_v18 = vmul.f32 -0.33333334, %v1073_v54 }
 0x1e3   : > { %2025 = vpow2.f32 %v1119_v45  ;;  %v1529_v21 = vmul.f32 -0.33333334, %v1074_v13 }
 0x1e4   : > { %2027 = vpow2.f32 %v1121_v49  ;;  %v1133_v24 = vmul.f32 1.442695, %v1527_v12  ;;  %v1135_v28 = vmul.f32 1.442695, %v1528_v18 }
 0x1e5   : > { %2029 = vpow2.f32 %v1123_v55  ;;  %v1137_v31 = vmul.f32 1.442695, %v1529_v21 }
 0x1e6   : > { %2031 = vpow2.f32 %v1125_v50 }
 0x1e7   : > { %v2014_v61 = vpop.eup %2013  ;;  %2033 = vpow2.f32 %v1127_v59 }
 0x1e8   : > { %v2016_v62 = vpop.eup %2015  ;;  %v1139_v63 = vadd.f32 1.0, %v2014_v61  ;;  %2035 = vpow2.f32 %v1129_v60 }
 0x1e9   : > { %v2018_v0 = vpop.eup %2017  ;;  %v1140_v1 = vadd.f32 1.0, %v2016_v62  ;;  %2037 = vpow2.f32 %v1131_v56 }
 0x1ea   : > { %v2020_v2 = vpop.eup %2019  ;;  %2039 = vrcp.f32 %v1139_v63  ;;  %v1141_v3 = vadd.f32 1.0, %v2018_v0 }
 0x1eb   : > { %v2022_v4 = vpop.eup %2021  ;;  %2041 = vrcp.f32 %v1140_v1  ;;  %v1142_v5 = vadd.f32 1.0, %v2020_v2 }
 0x1ec   : > { %v2024_v47 = vpop.eup %2023  ;;  %2043 = vrcp.f32 %v1141_v3  ;;  %v1143_v7 = vadd.f32 1.0, %v2022_v4 }
 0x1ed   : > { %v2026_v8 = vpop.eup %2025  ;;  %2045 = vrcp.f32 %v1142_v5  ;;  %v1144_v9 = vadd.f32 1.0, %v2024_v47 }
 0x1ee   : > { %v2028_v10 = vpop.eup %2027  ;;  %2047 = vrcp.f32 %v1143_v7  ;;  %v1145_v11 = vadd.f32 1.0, %v2026_v8 }
 0x1ef   : > { %v2030_v14 = vpop.eup %2029  ;;  %2049 = vrcp.f32 %v1144_v9  ;;  %v1146_v15 = vadd.f32 1.0, %v2028_v10 }
 0x1f0   : > { %v2032_v16 = vpop.eup %2031  ;;  %2051 = vrcp.f32 %v1145_v11  ;;  %v1147_v17 = vadd.f32 1.0, %v2030_v14 }
 0x1f1   : > { %v2034_v19 = vpop.eup %2033  ;;  %2053 = vrcp.f32 %v1146_v15  ;;  %v1148_v20 = vadd.f32 1.0, %v2032_v16 }
 0x1f2   : > { %v2036_v22 = vpop.eup %2035  ;;  %2055 = vrcp.f32 %v1147_v17  ;;  %v1149_v23 = vadd.f32 1.0, %v2034_v19 }
 0x1f3   : > { %v2038_v25 = vpop.eup %2037  ;;  %2057 = vrcp.f32 %v1148_v20  ;;  %v1150_v26 = vadd.f32 1.0, %v2036_v22 }
 0x1f4   : > { %v2040_v27 = vpop.eup %2039  ;;  %2059 = vrcp.f32 %v1149_v23  ;;  %v1151_v43 = vadd.f32 1.0, %v2038_v25 }
 0x1f5   : > { %v2042_v30 = vpop.eup %2041  ;;  %2061 = vrcp.f32 %v1150_v26 }
 0x1f6   : > { %v2044_v32 = vpop.eup %2043  ;;  %v1634_v33 = vpack.c.bf16 %v2042_v30, %v2040_v27  ;;  %2063 = vpow2.f32 %v1133_v24 }
 0x1f7   : > { %v2046_v34 = vpop.eup %2045  ;;  %2065 = vpow2.f32 %v1135_v28 }
 0x1f8   : > { %v2048_v35 = vpop.eup %2047  ;;  %1635 = vst [vmem:[%s2592_s5] sm:$0xff] %v1634_v33   ;;  %v1639_v37 = vpack.c.bf16 %v2046_v34, %v2044_v32  ;;  %2067 = vpow2.f32 %v1137_v31 }
 0x1f9   : > { %v2050_v29 = vpop.eup %2049  ;;  %2069 = vrcp.f32 %v1151_v43 }
 0x1fa   : > { %v2052_v38 = vpop.eup %2051  ;;  %1678 = vst [vmem:[%s2592_s5 + $0x8] sm:$0xff] %v1639_v37   ;;  %v1644_v39 = vpack.c.bf16 %v2050_v29, %v2048_v35 }
 0x1fb   : > { %v2054_v40 = vpop.eup %2053 }
 0x1fc   : > { %v2056_v41 = vpop.eup %2055  ;;  %1679 = vst [vmem:[%s2592_s5 + $0x10] sm:$0xff] %v1644_v39   ;;  %v1649_v42 = vpack.c.bf16 %v2054_v40, %v2052_v38 }
 0x1fd   : > { %v2058_v36 = vpop.eup %2057 }
 0x1fe   : > { %v2060_v44 = vpop.eup %2059  ;;  %1680 = vst [vmem:[%s2592_s5 + $0x18] sm:$0xff] %v1649_v42   ;;  %v1654_v45 = vpack.c.bf16 %v2058_v36, %v2056_v41 }
 0x1ff   : > { %v2062_v46 = vpop.eup %2061 }
 0x200   : > { %v2064_v48 = vpop.eup %2063  ;;  %1681 = vst [vmem:[%s2592_s5 + $0x20] sm:$0xff] %v1654_v45   ;;  %v1659_v49 = vpack.c.bf16 %v2062_v46, %v2060_v44 }
 0x201   : > { %v1152_v51 = vadd.f32 1.0, %v2064_v48  ;;  %v2066_v52 = vpop.eup %2065 }
 0x202   : > { %1682 = vst [vmem:[%s2592_s5 + $0x28] sm:$0xff] %v1659_v49   ;;  %v2068_v53 = vpop.eup %2067  ;;  %v1153_v55 = vadd.f32 1.0, %v2066_v52 }
 0x203   : > { %2071 = vrcp.f32 %v1152_v51  ;;  %v1154_v57 = vadd.f32 1.0, %v2068_v53  ;;  %v2070_v50 = vpop.eup %2069 }
 0x204   : > { %2073 = vrcp.f32 %v1153_v55 }
 0x205   : > { %2075 = vrcp.f32 %v1154_v57 }
 0x20d   : > { %v2072_v58 = vpop.eup %2071 }
 0x20e   : > { %v1664_v59 = vpack.c.bf16 %v2072_v58, %v2070_v50  ;;  %v2074_v60 = vpop.eup %2073 }
 0x20f   : > { %v2076_v56 = vpop.eup %2075 }
 0x210   : > { %1683 = vst [vmem:[%s2592_s5 + $0x30] sm:$0xff] %v1664_v59   ;;  %v1669_v61 = vpack.c.bf16 %v2076_v56, %v2074_v60 }
 0x212   : > { %1684 = vst [vmem:[%s2592_s5 + $0x38] sm:$0xff] %v1669_v61  }
 0x213 PF: > { %s1548_s24 = sshll.u32 %s2281_s19, 4  ;;  %s1549_s15 = sshll.u32 %s2277_s18, 5 }
 0x214   : > { %s1288_s10 = sshll.u32 %s2575_s27, 4  ;;  %s1285_s11 = sadd.s32 %s1549_s15, %s1548_s24  ;;  %s2609_s10 = int_to_ptr.vmem [resolvable:$true] %s1288_s10 }
 0x215   : > { %s1550_s29 = sshll.u32 %s1285_s11, 6  ;;  %s1268_s1 = scalar_lea.sflag [#allocation6], %s2530_s4 }
 0x216   : > { %s2614_s8 = scalar_lea.hbm %s2723_s2, %s1550_s29  ;;  %s2135_s9 = scalar_lea.vmem %s2609_s10, 1024 }
 0x217   : > { %p2136_p3 = scmp.ne.s32.totalorder %s2609_s10, %s2135_s9  ;;  %s2301_s18 = smov [#allocation9]  }
 0x218   : > { %s2139_s30 = sshll.u32 %s2301_s18, 4  ;;  %s2140_s30 = int_to_ptr.vmem [resolvable:$false] %s2139_s30 }
 0x219   : > { %p2137_p6 = pnand %p2136_p3, %p2464_p12  ;;  %s2141_s25 = scalar_lea.vmem %s2140_s30, 2048 }
 0x21a   : > { %p2142_p13 = scmp.lt.s32.totalorder %s2609_s10, %s2140_s30  ;;  %p2143_p2 = scmp.lt.s32.totalorder %s2141_s25, %s2135_s9 }
 0x21b   : > { %p2138_p8 = pneg %p2137_p6 }
 0x21c   : > { %p2144_p4 = por %p2143_p2, %p2142_p13 }
 0x21e   : > { %p2145_p5 = pnand %p2144_p4, %p2138_p8 }
 0x220   : > { %2148 = shalt.err (!%p2145_p5)
}
 0x221   : > { %s2149_s27 = scalar_lea.hbm %s2614_s8, 1024  ;;  %s2153_s11 = scalar_lea.hbm %s2723_s2, 6144 }
 0x222   : > { %p2150_p10 = scmp.ne.s32.totalorder %s2614_s8, %s2149_s27  ;;  %p2154_p9 = scmp.lt.u32.totalorder %s2614_s8, %s2723_s2 }
 0x223   : > { %p2155_p11 = scmp.lt.u32.totalorder %s2153_s11, %s2149_s27  ;;  %p2157_p3 = scmp.lt.u32.totalorder %s2149_s27, %s2614_s8 }
 0x224   : > { %p2151_p1 = pnand %p2150_p10, %p2464_p12 }
 0x225   : > { %p2156_p0 = por %p2155_p11, %p2154_p9 }
 0x226   : > { %p2152_p7 = pneg %p2151_p1 }
 0x227   : > { %p2158_p6 = por %p2157_p3, %p2156_p0 }
 0x229   : > { %p2159_p8 = pnand %p2158_p6, %p2152_p7 }
 0x22b   : > { %2162 = shalt.err (!%p2159_p8)
}
 0x22c   : > { %s2302_s28 = smov 64   ;;  %s2764_s9 = sld [smem:[#allocation19_spill]] }
 0x22d   : > { %s2303_s18 = smov 4   ;;  %s1590_s30 = sshll.u32 %s2281_s19, 10 }
 0x22e   : > { %1807 = dma.vmem_to_hbm [thread:$0]  (%p2464_p12), %s2609_s10, 1024, %s2614_s8, %s1268_s1, %s2302_s28, %s2302_s28, %s2303_s18  }
 0x22f   : > { %s2765_s24 = sld [smem:[#allocation23_spill]]  ;;  %s1304_s11 = sshll.u32 %s2592_s5, 4  ;;  %s2650_s11 = int_to_ptr.vmem [resolvable:$true] %s1304_s11 }
 0x230   : > { %s2654_s29 = scalar_lea.sflag [#allocation11], %s250_s3  ;;  %s2163_s7 = scalar_lea.vmem %s2650_s11, 1024 }
 0x231   : > { %p2164_p13 = scmp.ne.s32.totalorder %s2650_s11, %s2163_s7  ;;  %s2304_s19 = smov [#allocation10]  }
 0x232   : > { %p2766_p2 = scmp.ne.s32.totalorder %s2764_s9, 0  ;;  %s2167_s4 = sshll.u32 %s2304_s19, 4  ;;  %s2168_s4 = int_to_ptr.vmem [resolvable:$false] %s2167_s4 }
 0x233   : > { %s2169_s10 = scalar_lea.vmem %s2168_s4, 2048  ;;  %p2170_p5 = scmp.lt.s32.totalorder %s2650_s11, %s2168_s4 }
 0x234   : > { %p2165_p4 = pnand %p2164_p13, %p2766_p2  ;;  %p2171_p10 = scmp.lt.s32.totalorder %s2169_s10, %s2163_s7 }
 0x235   : > { %s2647_s15 = scalar_lea.hbm %s2765_s24, %s1590_s30 }
 0x236   : > { %p2166_p12 = pneg %p2165_p4  ;;  %p2172_p1 = por %p2171_p10, %p2170_p5 }
 0x238   : > { %p2173_p7 = pnand %p2172_p1, %p2166_p12 }
 0x23a   : > { %2176 = shalt.err (!%p2173_p7)
}
 0x23b   : > { %s2177_s3 = scalar_lea.hbm %s2647_s15, 1024  ;;  %s2181_s1 = scalar_lea.hbm %s2765_s24, 2048 }
 0x23c   : > { %p2178_p9 = scmp.ne.s32.totalorder %s2647_s15, %s2177_s3  ;;  %p2182_p3 = scmp.lt.u32.totalorder %s2647_s15, %s2765_s24 }
 0x23d   : > { %p2183_p6 = scmp.lt.u32.totalorder %s2181_s1, %s2177_s3  ;;  %p2185_p13 = scmp.lt.u32.totalorder %s2177_s3, %s2647_s15 }
 0x23e   : > { %p2179_p11 = pnand %p2178_p9, %p2766_p2 }
 0x23f   : > { %p2184_p8 = por %p2183_p6, %p2182_p3 }
 0x240   : > { %p2180_p0 = pneg %p2179_p11 }
 0x241   : > { %p2186_p4 = por %p2185_p13, %p2184_p8 }
 0x243   : > { %p2187_p12 = pnand %p2186_p4, %p2180_p0 }
 0x245   : > { %2190 = shalt.err (!%p2187_p12)
}
 0x246   : > { %1808 = dma.vmem_to_hbm [thread:$0]  (%p2766_p2), %s2650_s11, 1024, %s2647_s15, %s2654_s29, %s2302_s28, %s2302_s28, %s2303_s18  }
 0x247 PF: > { %s2767_s25 = sld [smem:[#allocation17_spill]]  ;;  %s2768_s27 = sld [smem:[#allocation18_spill]] }
 0x248   : > { %p1829_p5 = scmp.ge.s32.totalorder %s2293_s22, 2 }
 0x24d   : > { %s1319_s7 = sand.u32 1, %s2767_s25   ;;  %p2769_p10 = scmp.ne.s32.totalorder %s2768_s27, 0 }
 0x24e   : > { %s1320_s19 = scalar_lea.sflag [#allocation6], %s1319_s7 }
 0x24f   : > { %p1820_p1 = pnand %p1829_p5, %p2769_p10 }
 0x251   : > { %2244 = dma.done.wait (!%p1820_p1), %s1320_s19, 1024  }
 0x252   : > { %2246 = vsyncadd (!%p1820_p1), %s1320_s19, 4294966272  ;;  %s2770_s4 = sld [smem:[#allocation16_spill]]  ;;  %s2771_s9 = sld [smem:[#allocation20_spill]] }
 0x258   : > { %s1328_s10 = sand.u32 1, %s2770_s4   ;;  %p2772_p7 = scmp.ne.s32.totalorder %s2771_s9, 0 }
 0x259   : > { %s1329_s3 = scalar_lea.sflag [#allocation11], %s1328_s10 }
 0x25a   : > { %p1823_p9 = pnand %p1829_p5, %p2772_p7 }
 0x25c   : > { %2248 = dma.done.wait (!%p1823_p9), %s1329_s3, 1024  }
 0x25d   : > { %2250 = vsyncadd (!%p1823_p9), %s1329_s3, 4294966272  ;;  %s24_s22 = sadd.s32 1, %s2293_s22   ;;  %s2773_s28 = smov %s2478_s12 }
 0x25e   : > { %p21_p2 = scmp.ge.s32.totalorder %s24_s22, 8   ;;  %s2774_s11 = sld [smem:[#allocation21_spill]] }
 0x25f   : > { %s2775_s12 = smov %s2257_s13  ;;  %s2776_s13 = smov %s2261_s14 }
 0x260   : > { %s2777_s14 = smov %s2773_s28  ;;  %s2778_s15 = smov %s2269_s16 }
 0x261   : > { %s2779_s16 = smov %s2273_s17  ;;  %s2780_s17 = smov %s2481_s26 }
 0x262   : > { %s2781_s18 = smov %s2285_s20  ;;  %s2782_s19 = smov %s2289_s21 }
 0x263   : > { %s2784_s21 = smov %s2790_s23  ;;  %23 = sbr.rel (!%p21_p2) target bundleno = 15 (0xf), region = 119 }
 0x264   : > { %s2783_s20 = smov %s2774_s11 }
 0x26a   :  { %1334 = vsyncpa [#allocation5], 1 }
 0x26b   :  { %1336 = vsyncpa [#allocation5 + $0x1], 1 }
 0x26c   :  { %1337 = vsyncpa [#allocation8], 1 }
 0x26d   :  { %1338 = vsyncpa [#allocation6], 1 }
 0x26e   :  { %1340 = vsyncpa [#allocation6 + $0x1], 1 }
 0x26f   :  { %1341 = vsyncpa [#allocation11], 1 }
 0x270   :  { %1343 = vsyncpa [#allocation11 + $0x1], 1 }

</bundles_post_ra>
